<compile_context>
chip_gen: v7x
topology: tpu7x:2x2x1
jax: 0.10.0
libtpu: 0.0.40
codegen_flags: <defaults>
</compile_context>

<pallas_src>
import functools

import jax
import jax.numpy as jnp
from jax import lax
from jax.experimental import pallas as pl
from jax.experimental.pallas import tpu as pltpu


def _round_up(x, m):
    return -(-x // m) * m


def conv_gate_stats_kernel(xa_ref, xb_ref, w_ref, b_ref, z_ref, s1_ref, s2_ref,
                           win_ref, *, cout, lane_tile, halo, shifts, num_tiles,
                           valid_last):
    """Fused conv1/conv2/conv_connection + gating + partial BN statistics.

    xa_ref : (2*Cin, TO)           bf16 phase-split input, this tile's lanes
    xb_ref : (2*Cin, HALO)         bf16 halo (next HALO lanes of the same row)
    w_ref  : (Q, 3*Cout, 2*Cin)    bf16 shift-grouped stacked weights
    b_ref  : (3*Cout, 1)           f32 stacked biases [b1; b2; bc]
    z_ref  : (Cout, TO)            f32 gated pre-BN output tile
    s1_ref, s2_ref : (1,1,Cout,1)  f32 per-tile partial sum / sum-of-squares
    win_ref: (2*Cin, TO+HALO)      bf16 VMEM scratch (contiguous window)
    """
    i = pl.program_id(1)

    # Stitch tile + halo into one contiguous window so every tap read below is
    # a STATIC-offset slice (no dynamic lane indexing anywhere in the kernel).
    win_ref[:, :lane_tile] = xa_ref[...]
    win_ref[:, lane_tile:lane_tile + halo] = xb_ref[...]

    # One contiguous window read + one MXU matmul per distinct lane shift q;
    # the phase selection lives in the weight columns.
    acc = None
    for t, q in enumerate(shifts):
        win = win_ref[:, q:q + lane_tile]                       # (2*Cin, TO)
        part = jnp.dot(w_ref[t], win, preferred_element_type=jnp.float32)
        acc = part if acc is None else acc + part
    acc = acc + b_ref[...]                                      # (3*Cout, TO) f32

    c1 = acc[0:cout]
    c2 = acc[cout:2 * cout]
    cc = acc[2 * cout:3 * cout]
    # sigmoid(x) = 0.5*(tanh(x/2)+1): EUP-only, no VPU divide, exact.
    sig = 0.5 * (jnp.tanh(0.5 * c1) + 1.0)
    z = sig * jnp.tanh(c2) + cc
    z_ref[...] = z

    # Partial BatchNorm statistics.  Only the last tile can hold padded
    # (invalid) lanes, so the iota/mask path is gated onto it with pl.when.
    if valid_last == lane_tile:
        s1_ref[0, 0] = jnp.sum(z, axis=1, keepdims=True)
        s2_ref[0, 0] = jnp.sum(z * z, axis=1, keepdims=True)
    else:
        @pl.when(i < num_tiles - 1)
        def _():
            s1_ref[0, 0] = jnp.sum(z, axis=1, keepdims=True)
            s2_ref[0, 0] = jnp.sum(z * z, axis=1, keepdims=True)

        @pl.when(i == num_tiles - 1)
        def _():
            lane = lax.broadcasted_iota(jnp.int32, z.shape, 1)
            m = (lane < valid_last).astype(jnp.float32)
            zm = z * m
            s1_ref[0, 0] = jnp.sum(zm, axis=1, keepdims=True)
            s2_ref[0, 0] = jnp.sum(zm * z, axis=1, keepdims=True)


def _build_shift_weights(w1, w2, wc, *, kernel_size, stride, padding, dilation,
                         cin, cout, dtype):
    """Group the K gated taps + the 1x1 stride-2 connection tap by lane shift q.

    Gated tap k reads x_pad[2*o + k*dilation]; the connection conv reads
    x_pad[2*o + padding].  Writing each offset as 2*q + r, a tap is a contiguous
    window of the phase-split input shifted by q, with phase r selected by which
    Cin-column block of the (3*Cout, 2*Cin) weight is non-zero.
    """
    groups = {}

    def add(q, r, row0, wmat):
        groups.setdefault(q, []).append((row0, r, wmat))

    for k in range(kernel_size):
        kd = k * dilation
        add(kd // stride, kd % stride, 0, w1[:, :, k])
        add(kd // stride, kd % stride, cout, w2[:, :, k])
    add(padding // stride, padding % stride, 2 * cout, wc[:, :, 0])   # connection

    qs = tuple(sorted(groups.keys()))
    mats = []
    for q in qs:
        wq = jnp.zeros((3 * cout, stride * cin), jnp.float32)
        for row0, r, wmat in groups[q]:
            wq = wq.at[row0:row0 + cout, r * cin:(r + 1) * cin].add(wmat)
        mats.append(wq)
    return jnp.stack(mats, axis=0).astype(dtype), qs    # (Q, 3*Cout, 2*Cin)


def rdconv1d_forward(x, params, *, kernel_size, stride, padding, dilation,
                     lane_tile=2048, eps=1e-5, compute_dtype=jnp.bfloat16):
    w1, b1, w2, b2, wc, bc, gamma, beta = params
    B, Cin, L = x.shape
    Cout = w1.shape[0]
    K = kernel_size
    # conv_connection is hard-wired to stride 2; the residual add in the module
    # only shape-checks when the gated path is also stride 2.
    assert stride == 2, "RDConv1d forward requires stride == 2"

    L_out = (L + 2 * padding - dilation * (K - 1) - 1) // stride + 1
    L_conn = (L - 1) // 2 + 1
    assert L_out == L_conn, "gated path and connection conv lengths must match"

    # ---- shift-grouped weights ------------------------------------------------
    w_shift, qs = _build_shift_weights(
        w1, w2, wc, kernel_size=K, stride=stride, padding=padding,
        dilation=dilation, cin=Cin, cout=Cout, dtype=compute_dtype)
    Q = len(qs)
    q_max = max(qs)

    # ---- lane tiling (output positions on lanes) -------------------------------
    halo = _round_up(max(q_max, 1), 128)
    lane_tile = _round_up(lane_tile, 128)
    TO = min(lane_tile, _round_up(L_out, 128))
    TO = _round_up(max(TO, halo), halo)          # halo block must divide the tile
    L_out_pad = _round_up(L_out, TO)
    num_tiles = L_out_pad // TO
    ratio = TO // halo

    # ---- phase-split padded input: x_ph[b, p*Cin+c, j] = x_pad[b, c, 2*j+p] ----
    L_ph = _round_up(max(L_out_pad + halo, -(-(padding + L) // stride)), TO)
    right = stride * L_ph - padding - L
    x_padded = jnp.pad(x, ((0, 0), (0, 0), (padding, right)))
    x_ph = x_padded.reshape(B, Cin, L_ph, stride)
    x_ph = jnp.transpose(x_ph, (0, 3, 1, 2)).reshape(B, stride * Cin, L_ph)
    x_ph = x_ph.astype(compute_dtype)

    b_comb = jnp.concatenate([b1, b2, bc]).astype(jnp.float32).reshape(3 * Cout, 1)

    # ---- VMEM budget / compiler params -----------------------------------------
    ebytes = jnp.dtype(compute_dtype).itemsize
    block_bytes = (2 * (stride * Cin * (TO + halo) * ebytes)     # xa+xb (dbl buf)
                   + 2 * (Cout * TO * 4)                         # z tile (dbl buf)
                   + stride * Cin * (TO + halo) * ebytes         # window scratch
                   + Q * 3 * Cout * stride * Cin * ebytes        # weights
                   + 3 * Cout * 4 + 4 * Cout * 4)                # bias + stats
    cparams = dict(dimension_semantics=("parallel", "parallel"))
    if block_bytes > 24 * 1024 * 1024:
        # keep headroom under the 64 MiB physical VMEM of v7x
        cparams["vmem_limit_bytes"] = int(min(2 * block_bytes, 56 * 1024 * 1024))

    kern = functools.partial(
        conv_gate_stats_kernel, cout=Cout, lane_tile=TO, halo=halo, shifts=qs,
        num_tiles=num_tiles, valid_last=L_out - (num_tiles - 1) * TO)

    z, s1, s2 = pl.pallas_call(
        kern,
        out_shape=(jax.ShapeDtypeStruct((B, Cout, L_out_pad), jnp.float32),
                   jax.ShapeDtypeStruct((B, num_tiles, Cout, 1), jnp.float32),
                   jax.ShapeDtypeStruct((B, num_tiles, Cout, 1), jnp.float32)),
        grid_spec=pltpu.PrefetchScalarGridSpec(
            num_scalar_prefetch=0,
            grid=(B, num_tiles),
            in_specs=[
                pl.BlockSpec((None, stride * Cin, TO), lambda b, i: (b, 0, i)),
                pl.BlockSpec((None, stride * Cin, halo),
                             lambda b, i: (b, 0, (i + 1) * ratio)),
                pl.BlockSpec((Q, 3 * Cout, stride * Cin), lambda b, i: (0, 0, 0)),
                pl.BlockSpec((3 * Cout, 1), lambda b, i: (0, 0)),
            ],
            out_specs=[
                pl.BlockSpec((None, Cout, TO), lambda b, i: (b, 0, i)),
                pl.BlockSpec((1, 1, Cout, 1), lambda b, i: (b, i, 0, 0)),
                pl.BlockSpec((1, 1, Cout, 1), lambda b, i: (b, i, 0, 0)),
            ],
            scratch_shapes=[pltpu.VMEM((stride * Cin, TO + halo), compute_dtype)]),
        compiler_params=pltpu.CompilerParams(**cparams),
    )(x_ph, x_ph, w_shift, b_comb)

    # ---- tiny per-channel BN fuse (training-mode biased batch stats) -----------
    # NOTE: E[z^2]-mean^2 can lose precision vs. the centered form when
    # |mean| >> std; fine at this tolerance (clamped at 0 for safety).
    count = float(B * L_out)
    mean = jnp.sum(s1, axis=(0, 1))[:, 0] / count
    ex2 = jnp.sum(s2, axis=(0, 1))[:, 0] / count
    var = jnp.maximum(ex2 - mean * mean, 0.0)
    scale = gamma * lax.rsqrt(var + eps)
    shift = beta - mean * scale

    # ---- BN affine + ReLU epilogue: one XLA fusion with the final slice --------
    # (Output is already (B, Cout, L_out_*) - no transpose needed.)
    y = jnp.maximum(z[:, :, :L_out] * scale[None, :, None] + shift[None, :, None],
                    0.0)
    return y


def ref_forward(x, params, *, kernel_size, stride, padding, dilation,
                eps=1e-5, compute_dtype=jnp.bfloat16):
    """Pure-JAX reference mirroring the PyTorch forward (training-mode BN).

    Conv inputs are cast to the kernel's compute dtype (bf16 on the MXU) with an
    f32 accumulator so the comparison isolates algorithmic errors.
    """
    w1, b1, w2, b2, wc, bc, gamma, beta = params
    xb = x.astype(compute_dtype)
    dn = lax.conv_dimension_numbers(x.shape, w1.shape, ('NCH', 'OIH', 'NCH'))
    dn_c = lax.conv_dimension_numbers(x.shape, wc.shape, ('NCH', 'OIH', 'NCH'))

    c1 = lax.conv_general_dilated(
        xb, w1.astype(compute_dtype), (stride,), [(padding, padding)],
        rhs_dilation=(dilation,), dimension_numbers=dn,
        preferred_element_type=jnp.float32) + b1[None, :, None]
    c2 = lax.conv_general_dilated(
        xb, w2.astype(compute_dtype), (stride,), [(padding, padding)],
        rhs_dilation=(dilation,), dimension_numbers=dn,
        preferred_element_type=jnp.float32) + b2[None, :, None]
    cc = lax.conv_general_dilated(
        xb, wc.astype(compute_dtype), (2,), [(0, 0)], dimension_numbers=dn_c,
        preferred_element_type=jnp.float32) + bc[None, :, None]

    z = jax.nn.sigmoid(c1) * jnp.tanh(c2) + cc
    mean = jnp.mean(z, axis=(0, 2), keepdims=True)
    var = jnp.mean((z - mean) ** 2, axis=(0, 2), keepdims=True)
    zhat = (z - mean) * lax.rsqrt(var + eps)
    y = gamma[None, :, None] * zhat + beta[None, :, None]
    return jnp.maximum(y, 0.0)


if __name__ == "__main__":
    # Small, module-consistent shapes.  kernel_size=3, stride=2, padding=1,
    # dilation=1 makes the gated-path length equal the stride-2 connection length.
    B, Cin, Cout, L = 2, 4, 8, 16
    K, stride, padding, dilation = 3, 2, 1, 1

    key = jax.random.PRNGKey(0)
    ks = jax.random.split(key, 7)
    bound = 1.0 / (Cin * K) ** 0.5
    bound_c = 1.0 / Cin ** 0.5
    w1 = jax.random.uniform(ks[0], (Cout, Cin, K), jnp.float32, -bound, bound)
    b1 = jax.random.uniform(ks[1], (Cout,), jnp.float32, -bound, bound)
    w2 = jax.random.uniform(ks[2], (Cout, Cin, K), jnp.float32, -bound, bound)
    b2 = jax.random.uniform(ks[3], (Cout,), jnp.float32, -bound, bound)
    wc = jax.random.uniform(ks[4], (Cout, Cin, 1), jnp.float32, -bound_c, bound_c)
    bc = jax.random.uniform(ks[5], (Cout,), jnp.float32, -bound_c, bound_c)
    gamma = jnp.ones((Cout,), jnp.float32)   # nn.BatchNorm1d default weight
    beta = jnp.zeros((Cout,), jnp.float32)   # nn.BatchNorm1d default bias
    x = jax.random.normal(ks[6], (B, Cin, L), jnp.float32)
    params = (w1, b1, w2, b2, wc, bc, gamma, beta)

    fwd = jax.jit(functools.partial(
        rdconv1d_forward, kernel_size=K, stride=stride, padding=padding,
        dilation=dilation))
    out = jax.block_until_ready(fwd(x, params))

    ref = ref_forward(x, params, kernel_size=K, stride=stride, padding=padding,
                      dilation=dilation)
    L_out = (L + 2 * padding - dilation * (K - 1) - 1) // stride + 1
    assert out.shape == ref.shape == (B, Cout, L_out), (out.shape, ref.shape)
    err = float(jnp.max(jnp.abs(out - ref)))
    assert err < 1e-2, f"max abs err {err}"
    print("KERNEL_OK")
</pallas_src>

<mosaic_0001>
module attributes {stable_mosaic.version = 11 : i64} {
  func.func @conv_gate_stats_kernel(%arg0: i32, %arg1: i32, %arg2: memref<1x8x128xbf16, #tpu.memory_space<vmem>>, %arg3: memref<1x8x128xbf16, #tpu.memory_space<vmem>>, %arg4: memref<2x24x8xbf16, #tpu.memory_space<vmem>>, %arg5: memref<24x1xf32, #tpu.memory_space<vmem>>, %arg6: memref<1x8x128xf32, #tpu.memory_space<vmem>>, %arg7: memref<1x1x8x1xf32, #tpu.memory_space<vmem>>, %arg8: memref<1x1x8x1xf32, #tpu.memory_space<vmem>>, %arg9: memref<8x256xbf16, #tpu.memory_space<vmem>>) attributes {dimension_semantics = [#tpu.dimension_semantics<parallel>, #tpu.dimension_semantics<parallel>], iteration_bounds = array<i64: 2, 1>, scalar_prefetch = 0 : i64, scratch_operands = 1 : i64, tpu.core_type = #tpu.core_type<tc>, window_params = [{transform_indices = @transform_0, window_bounds = array<i64: 1, 8, 128>}, {transform_indices = @transform_1, window_bounds = array<i64: 1, 8, 128>}, {pipeline_mode = #tpu.pipeline_mode<synchronous>, transform_indices = @transform_2, window_bounds = array<i64: 2, 24, 8>}, {pipeline_mode = #tpu.pipeline_mode<synchronous>, transform_indices = @transform_3, window_bounds = array<i64: 24, 1>}, {transform_indices = @transform_4, window_bounds = array<i64: 1, 8, 128>}, {transform_indices = @transform_5, window_bounds = array<i64: 1, 1, 8, 1>}, {transform_indices = @transform_6, window_bounds = array<i64: 1, 1, 8, 1>}]} {
    %c0 = arith.constant 0 : index
    %c0_0 = arith.constant 0 : index
    %c0_1 = arith.constant 0 : index
    %0 = vector.load %arg2[%c0, %c0_0, %c0_1] : memref<1x8x128xbf16, #tpu.memory_space<vmem>>, vector<1x8x128xbf16>
    %1 = vector.shape_cast %0 : vector<1x8x128xbf16> to vector<8x128xbf16>
    %c0_2 = arith.constant 0 : index
    %c0_3 = arith.constant 0 : index
    %2 = vector.load %arg9[%c0_2, %c0_3] : memref<8x256xbf16, #tpu.memory_space<vmem>>, vector<8x128xbf16>
    tpu.vector_store %arg9[%c0_2, %c0_3], %1 {strides = array<i32>} : memref<8x256xbf16, #tpu.memory_space<vmem>>, vector<8x128xbf16>,
    %c0_4 = arith.constant 0 : index
    %c0_5 = arith.constant 0 : index
    %c0_6 = arith.constant 0 : index
    %3 = vector.load %arg3[%c0_4, %c0_5, %c0_6] : memref<1x8x128xbf16, #tpu.memory_space<vmem>>, vector<1x8x128xbf16>
    %4 = vector.shape_cast %3 : vector<1x8x128xbf16> to vector<8x128xbf16>
    %c0_7 = arith.constant 0 : index
    %c128 = arith.constant 128 : index
    %5 = vector.load %arg9[%c0_7, %c128] : memref<8x256xbf16, #tpu.memory_space<vmem>>, vector<8x128xbf16>
    tpu.vector_store %arg9[%c0_7, %c128], %4 {strides = array<i32>} : memref<8x256xbf16, #tpu.memory_space<vmem>>, vector<8x128xbf16>,
    %c0_8 = arith.constant 0 : index
    %c0_9 = arith.constant 0 : index
    %6 = vector.load %arg9[%c0_8, %c0_9] : memref<8x256xbf16, #tpu.memory_space<vmem>>, vector<8x128xbf16>
    %c0_10 = arith.constant 0 : index
    %c0_11 = arith.constant 0 : index
    %c0_12 = arith.constant 0 : index
    %7 = vector.load %arg4[%c0_10, %c0_11, %c0_12] : memref<2x24x8xbf16, #tpu.memory_space<vmem>>, vector<1x24x8xbf16>
    %8 = vector.shape_cast %7 : vector<1x24x8xbf16> to vector<24x8xbf16>
    %cst = arith.constant dense<0.000000e+00> : vector<24x128xf32>
    %9 = tpu.matmul %8, %6, %cst {dimension_numbers = #tpu.dot_dimension_numbers<[1], [0], [0], [1], [0, 0, 1, 1], [], []>} : vector<24x8xbf16>, vector<8x128xbf16>, vector<24x128xf32> -> vector<24x128xf32>
    %c0_13 = arith.constant 0 : index
    %c1 = arith.constant 1 : index
    %10 = vector.load %arg9[%c0_13, %c1] : memref<8x256xbf16, #tpu.memory_space<vmem>>, vector<8x128xbf16>
    %c1_14 = arith.constant 1 : index
    %c0_15 = arith.constant 0 : index
    %c0_16 = arith.constant 0 : index
    %11 = vector.load %arg4[%c1_14, %c0_15, %c0_16] : memref<2x24x8xbf16, #tpu.memory_space<vmem>>, vector<1x24x8xbf16>
    %12 = vector.shape_cast %11 : vector<1x24x8xbf16> to vector<24x8xbf16>
    %cst_17 = arith.constant dense<0.000000e+00> : vector<24x128xf32>
    %13 = tpu.matmul %12, %10, %cst_17 {dimension_numbers = #tpu.dot_dimension_numbers<[1], [0], [0], [1], [0, 0, 1, 1], [], []>} : vector<24x8xbf16>, vector<8x128xbf16>, vector<24x128xf32> -> vector<24x128xf32>
    %14 = arith.addf %9, %13 : vector<24x128xf32>
    %c0_18 = arith.constant 0 : index
    %c0_19 = arith.constant 0 : index
    %15 = vector.load %arg5[%c0_18, %c0_19] : memref<24x1xf32, #tpu.memory_space<vmem>>, vector<24x1xf32>
    %16 = vector.broadcast %15 : vector<24x1xf32> to vector<24x128xf32>
    %17 = arith.addf %14, %16 : vector<24x128xf32>
    %18 = vector.extract_strided_slice %17 {offsets = [0, 0], sizes = [8, 128], strides = [1, 1]} : vector<24x128xf32> to vector<8x128xf32>
    %19 = vector.extract_strided_slice %17 {offsets = [8, 0], sizes = [8, 128], strides = [1, 1]} : vector<24x128xf32> to vector<8x128xf32>
    %20 = vector.extract_strided_slice %17 {offsets = [16, 0], sizes = [8, 128], strides = [1, 1]} : vector<24x128xf32> to vector<8x128xf32>
    %cst_20 = arith.constant 5.000000e-01 : f32
    %21 = vector.broadcast %cst_20 : f32 to vector<8x128xf32>
    %22 = arith.mulf %21, %18 : vector<8x128xf32>
    %23 = math.tanh %22 : vector<8x128xf32>
    %cst_21 = arith.constant 1.000000e+00 : f32
    %24 = vector.broadcast %cst_21 : f32 to vector<8x128xf32>
    %25 = arith.addf %23, %24 : vector<8x128xf32>
    %cst_22 = arith.constant 5.000000e-01 : f32
    %26 = vector.broadcast %cst_22 : f32 to vector<8x128xf32>
    %27 = arith.mulf %26, %25 : vector<8x128xf32>
    %28 = math.tanh %19 : vector<8x128xf32>
    %29 = arith.mulf %27, %28 : vector<8x128xf32>
    %30 = arith.addf %29, %20 : vector<8x128xf32>
    %c0_23 = arith.constant 0 : index
    %c0_24 = arith.constant 0 : index
    %c0_25 = arith.constant 0 : index
    %31 = vector.load %arg6[%c0_23, %c0_24, %c0_25] : memref<1x8x128xf32, #tpu.memory_space<vmem>>, vector<1x8x128xf32>
    %32 = vector.shape_cast %31 : vector<1x8x128xf32> to vector<8x128xf32>
    %33 = vector.shape_cast %30 : vector<8x128xf32> to vector<1x8x128xf32>
    tpu.vector_store %arg6[%c0_23, %c0_24, %c0_25], %33 {strides = array<i32>} : memref<1x8x128xf32, #tpu.memory_space<vmem>>, vector<1x8x128xf32>,
    %c0_i32 = arith.constant 0 : i32
    %34 = arith.cmpi slt, %arg1, %c0_i32 : i32
    %35 = arith.extui %34 : i1 to i32
    %c0_i32_26 = arith.constant 0 : i32
    %36 = arith.cmpi ne, %35, %c0_i32_26 : i32
    scf.if %36 {
      %cst_29 = arith.constant dense<0.000000e+00> : vector<8xf32>
      %40 = vector.multi_reduction <add>, %30, %cst_29 [1] : vector<8x128xf32> to vector<8xf32>
      %41 = vector.shape_cast %40 : vector<8xf32> to vector<8x1xf32>
      %c0_30 = arith.constant 0 : index
      %c0_31 = arith.constant 0 : index
      %c0_32 = arith.constant 0 : index
      %c0_33 = arith.constant 0 : index
      %42 = vector.load %arg7[%c0_30, %c0_31, %c0_32, %c0_33] : memref<1x1x8x1xf32, #tpu.memory_space<vmem>>, vector<1x1x8x1xf32>
      %43 = vector.shape_cast %42 : vector<1x1x8x1xf32> to vector<8x1xf32>
      %44 = vector.shape_cast %41 : vector<8x1xf32> to vector<1x1x8x1xf32>
      tpu.vector_store %arg7[%c0_30, %c0_31, %c0_32, %c0_33], %44 {strides = array<i32>} : memref<1x1x8x1xf32, #tpu.memory_space<vmem>>, vector<1x1x8x1xf32>,
      %45 = arith.mulf %30, %30 : vector<8x128xf32>
      %cst_34 = arith.constant dense<0.000000e+00> : vector<8xf32>
      %46 = vector.multi_reduction <add>, %45, %cst_34 [1] : vector<8x128xf32> to vector<8xf32>
      %47 = vector.shape_cast %46 : vector<8xf32> to vector<8x1xf32>
      %c0_35 = arith.constant 0 : index
      %c0_36 = arith.constant 0 : index
      %c0_37 = arith.constant 0 : index
      %c0_38 = arith.constant 0 : index
      %48 = vector.load %arg8[%c0_35, %c0_36, %c0_37, %c0_38] : memref<1x1x8x1xf32, #tpu.memory_space<vmem>>, vector<1x1x8x1xf32>
      %49 = vector.shape_cast %48 : vector<1x1x8x1xf32> to vector<8x1xf32>
      %50 = vector.shape_cast %47 : vector<8x1xf32> to vector<1x1x8x1xf32>
      tpu.vector_store %arg8[%c0_35, %c0_36, %c0_37, %c0_38], %50 {strides = array<i32>} : memref<1x1x8x1xf32, #tpu.memory_space<vmem>>, vector<1x1x8x1xf32>,
    } else {
    }
    %c0_i32_27 = arith.constant 0 : i32
    %37 = arith.cmpi eq, %arg1, %c0_i32_27 : i32
    %38 = arith.extui %37 : i1 to i32
    %c0_i32_28 = arith.constant 0 : i32
    %39 = arith.cmpi ne, %38, %c0_i32_28 : i32
    scf.if %39 {
      %40 = tpu.iota {dimensions = array<i32: 1>} : vector<8x128xi32>
      %c8_i32 = arith.constant 8 : i32
      %41 = vector.broadcast %c8_i32 : i32 to vector<8x128xi32>
      %42 = arith.cmpi slt, %40, %41 : vector<8x128xi32>
      %43 = arith.extui %42 : vector<8x128xi1> to vector<8x128xi32>
      %44 = arith.sitofp %43 : vector<8x128xi32> to vector<8x128xf32>
      %45 = arith.mulf %30, %44 : vector<8x128xf32>
      %cst_29 = arith.constant dense<0.000000e+00> : vector<8xf32>
      %46 = vector.multi_reduction <add>, %45, %cst_29 [1] : vector<8x128xf32> to vector<8xf32>
      %47 = vector.shape_cast %46 : vector<8xf32> to vector<8x1xf32>
      %c0_30 = arith.constant 0 : index
      %c0_31 = arith.constant 0 : index
      %c0_32 = arith.constant 0 : index
      %c0_33 = arith.constant 0 : index
      %48 = vector.load %arg7[%c0_30, %c0_31, %c0_32, %c0_33] : memref<1x1x8x1xf32, #tpu.memory_space<vmem>>, vector<1x1x8x1xf32>
      %49 = vector.shape_cast %48 : vector<1x1x8x1xf32> to vector<8x1xf32>
      %50 = vector.shape_cast %47 : vector<8x1xf32> to vector<1x1x8x1xf32>
      tpu.vector_store %arg7[%c0_30, %c0_31, %c0_32, %c0_33], %50 {strides = array<i32>} : memref<1x1x8x1xf32, #tpu.memory_space<vmem>>, vector<1x1x8x1xf32>,
      %51 = arith.mulf %45, %30 : vector<8x128xf32>
      %cst_34 = arith.constant dense<0.000000e+00> : vector<8xf32>
      %52 = vector.multi_reduction <add>, %51, %cst_34 [1] : vector<8x128xf32> to vector<8xf32>
      %53 = vector.shape_cast %52 : vector<8xf32> to vector<8x1xf32>
      %c0_35 = arith.constant 0 : index
      %c0_36 = arith.constant 0 : index
      %c0_37 = arith.constant 0 : index
      %c0_38 = arith.constant 0 : index
      %54 = vector.load %arg8[%c0_35, %c0_36, %c0_37, %c0_38] : memref<1x1x8x1xf32, #tpu.memory_space<vmem>>, vector<1x1x8x1xf32>
      %55 = vector.shape_cast %54 : vector<1x1x8x1xf32> to vector<8x1xf32>
      %56 = vector.shape_cast %53 : vector<8x1xf32> to vector<1x1x8x1xf32>
      tpu.vector_store %arg8[%c0_35, %c0_36, %c0_37, %c0_38], %56 {strides = array<i32>} : memref<1x1x8x1xf32, #tpu.memory_space<vmem>>, vector<1x1x8x1xf32>,
    } else {
    }
    return
  }
  func.func @transform_0(%arg0: i32, %arg1: i32) -> (i32, i32, i32) {
    %c0_i32 = arith.constant 0 : i32
    %c0_i32_0 = arith.constant 0 : i32
    return %arg0, %c0_i32, %arg1 : i32, i32, i32
  }
  func.func @transform_1(%arg0: i32, %arg1: i32) -> (i32, i32, i32) {
    %c1_i32 = arith.constant 1 : i32
    %0 = arith.addi %arg1, %c1_i32 : i32
    %c1_i32_0 = arith.constant 1 : i32
    %1 = arith.muli %0, %c1_i32_0 : i32
    %c0_i32 = arith.constant 0 : i32
    %c0_i32_1 = arith.constant 0 : i32
    return %arg0, %c0_i32, %1 : i32, i32, i32
  }
  func.func @transform_2(%arg0: i32, %arg1: i32) -> (i32, i32, i32) {
    %c0_i32 = arith.constant 0 : i32
    %c0_i32_0 = arith.constant 0 : i32
    %c0_i32_1 = arith.constant 0 : i32
    %c0_i32_2 = arith.constant 0 : i32
    return %c0_i32, %c0_i32_0, %c0_i32_1 : i32, i32, i32
  }
  func.func @transform_3(%arg0: i32, %arg1: i32) -> (i32, i32) {
    %c0_i32 = arith.constant 0 : i32
    %c0_i32_0 = arith.constant 0 : i32
    %c0_i32_1 = arith.constant 0 : i32
    return %c0_i32, %c0_i32_0 : i32, i32
  }
  func.func @transform_4(%arg0: i32, %arg1: i32) -> (i32, i32, i32) {
    %c0_i32 = arith.constant 0 : i32
    %c0_i32_0 = arith.constant 0 : i32
    return %arg0, %c0_i32, %arg1 : i32, i32, i32
  }
  func.func @transform_5(%arg0: i32, %arg1: i32) -> (i32, i32, i32, i32) {
    %c0_i32 = arith.constant 0 : i32
    %c0_i32_0 = arith.constant 0 : i32
    %c0_i32_1 = arith.constant 0 : i32
    return %arg0, %arg1, %c0_i32, %c0_i32_0 : i32, i32, i32, i32
  }
  func.func @transform_6(%arg0: i32, %arg1: i32) -> (i32, i32, i32, i32) {
    %c0_i32 = arith.constant 0 : i32
    %c0_i32_0 = arith.constant 0 : i32
    %c0_i32_1 = arith.constant 0 : i32
    return %arg0, %arg1, %c0_i32, %c0_i32_0 : i32, i32, i32, i32
  }
}

</mosaic_0001>

<bundles_post_ra>
// kernel: rdconv1d_forward.1
= control target key start
LH: loop header
LB: loop body
LE: loop exit
PB: predicated region body
PF: predicated region fallthrough
CT: control target
= control target key end

     0   :  { %s902_s21 = smov 0   ;;  %s904_s22 = smov 0   ;;  %s980_s0 = inlined_call_operand.vmem [shape: bf16[2,8,256], index: 0, kind: input, shape index: {}, may-alias: {0,1}]   ;;  %s981_s1 = inlined_call_operand.vmem [shape: bf16[2,8,256], index: 1, kind: input, shape index: {}, may-alias: {0,1}]   ;;  %s982_s2 = inlined_call_operand.vmem [shape: bf16[2,24,8], index: 2, kind: input, shape index: {}]   ;;  %s983_s3 = inlined_call_operand.vmem [shape: f32[24,1], index: 3, kind: input, shape index: {}]   ;;  %s984_s4 = inlined_call_operand.vmem [shape: f32[2,8,128], index: 4, kind: output, shape index: {0}]   ;;  %s985_s5 = inlined_call_operand.vmem [shape: f32[2,1,8,1], index: 5, kind: output, shape index: {1}]   ;;  %s986_s6 = inlined_call_operand.vmem [shape: f32[2,1,8,1], index: 6, kind: output, shape index: {2}]  }
   0x1   :  { %s906_s23 = smov 0  }
   0x2 LB: > { %s29_s24 = sadd.s32 1, %s858_s22  ;;  %p753_p0 = scmp.ge.s32.totalorder %s862_s23, 1  ;;  %s862_s23 = sphi %s906_s23, %s17_s23   ;;  %s858_s22 = sphi %s904_s22, %s988_s22   ;;  %s854_s21 = sphi %s902_s21, %s987_s21  }
   0x3   : > { %p31_p1 = scmp.ge.s32.totalorder %s29_s24, 2  ;;  %p259_p2 = scmp.lt.s32.totalorder %s862_s23, 3 }
   0x5   : > { %s990_s24 = smov (%p31_p1, %s29_s24), 0  ;;  %p260_p3 = pnand %p753_p0, %p259_p2 }
   0x6   : > { %p317_p4 = scmp.lt.s32.totalorder (!%p260_p3), %s854_s21, 1  ;;  %v832_v2 = vld [vmem:[%s982_s2] sm:$0xff] (!%p260_p3)   ;;  %vm389_vm0 = vcmask (!%p260_p3), 64512   ;;  %v834_v3 = vld [vmem:[%s982_s2 + $0xc] sm:$0xff] (!%p260_p3)   ;;  %vm396_vm1 = vcmask (!%p260_p3), 1043456   ;;  %v864_v9 = vmov (!%p260_p3), 0   ;;  %v558_v35 = vlaneseq (!%p260_p3) }
   0x7   : > { %263 = sbr.rel (%p260_p3) target bundleno = 538 (0x21a), region = 36  ;;  %795 = vmatprep.mubr.msk.bf16.mxu1 (!%p260_p3), %vm389_vm0, %v832_v2  ;;  %789 = vmatprep.mubr.msk.bf16.mxu0 (!%p260_p3), %vm389_vm0, %v834_v3  ;;  %v513_v5 = vld [vmem:[%s983_s3] sm:$0xff] (!%p260_p3)  ;;  %v833_v8 = vld [vmem:[%s982_s2 + $0x8] ss:$0 sps:$4 sm:$0xff] (!%p260_p3)   ;;  %s865_s19 = smov (!%p260_p3), 127   ;;  %v515_v13 = vld [vmem:[%s983_s3 + $0x10] sm:$0xff] (!%p260_p3) }
   0x8   : > { %828 = vset.pattern.permute.xlu1 (!%p260_p3), %v864_v9  ;;  %829 = vset.pattern.permute.xlu0 (!%p260_p3), %v864_v9  ;;  %v514_v11 = vld [vmem:[%s983_s3 + $0x8] sm:$0xff] (!%p260_p3)  ;;  %vm387_vm2 = vcmask (!%p260_p3), 1039360   ;;  %v835_v18 = vld [vmem:[%s982_s2 + $0x14] ss:$0 sps:$4 sm:$0xff] (!%p260_p3)   ;;  %v559_v36 = vand.u32 (!%p260_p3), 127, %v558_v35  ;;  %v866_v44 = vmov (!%p260_p3), 0.0  }
   0x9   : > { %518 = vperm.xlu1 (!%p260_p3), %828, %v513_v5   ;;  %vm566_vm4 = vcmask (!%p260_p3), 7168  }
   0xa   : > { %vm560_vm3 = vcmp.lt.s32.totalorder (!%p260_p3), %v559_v36, 8 }
   0xb   : > { %v774_v45 = vsel (!%p260_p3), %vm560_vm3, 1.0, %v866_v44 }
   0xd   : > { %523 = vperm.xlu1 (!%p260_p3), %828, %v514_v11  }
   0xe   : > { %s992_s21 = smov (!%p317_p4, %s854_s21), 1 }
   0xf   : > { %s920_s25 = sshll.u32 %s992_s21, 3 }
  0x10   : > { %s324_s28 = scalar_lea.vmem %s980_s0, %s920_s25  ;;  %s779_s29 = sadd.s32 4, %s920_s25 }
  0x11   : > { %s333_s8 = scalar_lea.vmem %s981_s1, %s779_s29  ;;  %v357_v0 = vld [vmem:[%s324_s28] sm:$0xf]  ;;  %s341_s30 = scalar_lea.vmem %s984_s4, %s920_s25 }
  0x12   : > { %358 = vst [vmem:[#allocation2] sm:$0xf] %v357_v0  ;;  %v359_v1 = vld [vmem:[%s333_s8] sm:$0xf]  ;;  %s348_s9 = scalar_lea.vmem %s985_s5, %s920_s25  ;;  %s355_s12 = scalar_lea.vmem %s986_s6, %s920_s25 }
  0x13   : > { %360 = vst [vmem:[#allocation2 + $0x4] sm:$0xf] %v359_v1 }
  0x19   : > { %v361_v4 = vld [vmem:[#allocation2] sm:$0xf] }
  0x1a   : > { %v365_v6 = vld [vmem:[#allocation2] sm:$0xff]  ;;  %800 = vmatprep.subr.msk.bf16.mxu1 %vm396_vm1, %v361_v4  ;;  %v463_v7 = vsel %vm396_vm1, %v361_v4, 0 }
  0x1b   : > { %v766_v10 = vcombine.low %v365_v6, %v365_v6  ;;  %794 = vmatpush3.bf16.msra.mxu1 %v463_v7  ;;  %v767_v12 = vcombine.high %v365_v6, %v365_v6 }
  0x1d   : > { %383 = vrot.lane.b32.xlu0 %v766_v10, %s865_s19 }
  0x1e   : > { %796 = vmatmul.mubr.msk.bf16.vlgmr.msra.gmra.mrb[0].mxu1 %vm389_vm0, %v833_v8 }
  0x21   : > { %385 = vrot.lane.b32.xlu0 %v767_v12, %s865_s19 }
  0x25   : > { %528 = vperm.xlu0 %829, %v515_v13  }
  0x88   : > { %v519_v24 = vpop.permute.xlu1 %518 }
  0x8c   : > { %v524_v33 = vpop.permute.xlu1 %523 }
  0x8f   : > { %v384_v14 = vpop.permute.xlu0 %383 }
  0x93   : > { %v386_v15 = vpop.permute.xlu0 %385 }
  0x94   : > { %v388_v16 = vsel %vm387_vm2, %v384_v14, %v386_v15 }
  0x95   : > { %799 = vmatprep.subr.msk.bf16.mxu0 %vm396_vm1, %v388_v16  ;;  %v398_v17 = vsel %vm396_vm1, %v388_v16, 0 }
  0x96   : > { %788 = vmatpush3.bf16.msra.mxu0 %v398_v17 }
  0x99   : > { %790 = vmatmul.mubr.msk.bf16.vlgmr.msra.gmra.mrb[0].mxu0 %vm389_vm0, %v835_v18 }
  0xa4   : > { %v529_v39 = vpop.permute.xlu0 %528 }
  0xf1   : > { %v797_v19 = vpop.f32.mrb[0].mxu1 }
  0xf2   : > { %v499_v20 = vpop.f32.mrb[1].mxu1 }
  0xf3   : > { %v798_v21 = vpop.f32.mrb[2].mxu1 }
  0xf4   : > { %v502_v22 = vpop.f32.mrb[3].mxu1 }
 0x16c   : > { %v791_v23 = vpop.f32.mrb[0].mxu0 }
 0x16d   : > { %v508_v25 = vadd.f32 %v797_v19, %v791_v23  ;;  %v434_v26 = vpop.f32.mrb[1].mxu0 }
 0x16e   : > { %v500_v27 = vadd.f32 %v499_v20, %v434_v26  ;;  %v792_v28 = vpop.f32.mrb[2].mxu0 }
 0x16f   : > { %v437_v29 = vpop.f32.mrb[3].mxu0  ;;  %v533_v42 = vadd.f32 %v529_v39, %v508_v25 }
 0x170   : > { %v531_v30 = vadd.f32 %v519_v24, %v500_v27  ;;  %v503_v31 = vadd.f32 %v502_v22, %v437_v29 }
 0x172   : > { %v534_v32 = vmul.f32 0.5, %v531_v30  ;;  %v532_v34 = vadd.f32 %v524_v33, %v503_v31 }
 0x174   : > { %836 = vtanh.f32 %v534_v32 }
 0x175   : > { %838 = vtanh.f32 %v532_v34 }
 0x17e   : > { %v837_v37 = vpop.eup %836 }
 0x17f   : > { %v536_v38 = vadd.f32 1.0, %v837_v37  ;;  %v839_v41 = vpop.eup %838 }
 0x181   : > { %v537_v40 = vmul.f32 0.5, %v536_v38 }
 0x183   : > { %v539_v43 = vmul.f32 %v839_v41, %v537_v40 }
 0x185   : > { %v540_v46 = vadd.f32 %v539_v43, %v533_v42 }
 0x187   : > { %v563_v47 = vmul.f32 %v774_v45, %v540_v46  ;;  %541 = vst [vmem:[%s341_s30] sm:$0xff] %v540_v46 }
 0x189   : > { %564 = vadd.xlane.f32.xlu1 %v563_v47  ;;  %v568_v48 = vmul.f32 %v563_v47, %v540_v46 }
 0x18b   : > { %569 = vadd.xlane.f32.xlu0 %v568_v48 }
 0x216   : > { %v565_v49 = vpop.xlane.xlu1 %564 }
 0x217   : > { %567 = vst.msk [vmem:[%s348_s9] sm:$0xff] %vm566_vm4, %v565_v49 }
 0x218   : > { %v570_v50 = vpop.xlane.xlu0 %569 }
 0x219   : > { %571 = vst.msk [vmem:[%s355_s12] sm:$0xff] %vm566_vm4, %v570_v50 }
 0x21a PF: > { %s17_s23 = sadd.s32 1, %s862_s23   ;;  %s987_s21 = smov %s858_s22 }
 0x21b   : > { %p14_p5 = scmp.ge.s32.totalorder %s17_s23, 4   ;;  %s988_s22 = smov %s990_s24 }
 0x21d   :  { %16 = sbr.rel (!%p14_p5) target bundleno = 2 (0x2), region = 102 }

</bundles_post_ra>
